<compile_context>
chip_gen: v7x
topology: tpu7x:2x2x1
jax: 0.10.0
libtpu: 0.0.40
codegen_flags: <defaults>
</compile_context>

<pallas_src>
import functools

import jax
import jax.numpy as jnp
from jax import lax
from jax.experimental import pallas as pl
from jax.experimental.pallas import tpu as pltpu

LN_EPS = 1e-5


def _rup(x, m):
    return (x + m - 1) // m * m


def _tpu_vmem_and_cores():
    """Per-TensorCore VMEM capacity and TC count (generation-aware sizing)."""
    vmem = 128 * 2**20
    try:
        info = pltpu.get_tpu_info()
        vmem = int(getattr(info, "vmem_capacity_bytes", vmem))
    except Exception:  # not on TPU / API shape changed -> conservative default
        pass
    # v7x (64 MiB VMEM per TC) is the only targeted 2-TensorCore generation.
    num_tc = 2 if vmem <= 80 * 2**20 else 1
    return vmem, num_tc


def _pick_nblk(n, per_row_bytes, budget_bytes):
    """Largest N-tile (multiple of 8 that divides N, or N itself) within budget."""
    if n <= 8:
        return n
    target = max(8, budget_bytes // max(per_row_bytes, 1))
    if n <= target:
        return n
    best = None
    cand = 8
    stop = min(n - 1, target)
    while cand <= stop:
        if n % cand == 0:
            best = cand
        cand += 8
    # TODO(synk): support a ragged last N-tile instead of falling back to full N.
    return best if best is not None else n


def _pick_bblk(b, per_batch_bytes, budget_bytes, multi_tc):
    """Batch elements per grid step: amortize ~0.35us/step overhead, bound VMEM,
    and keep >= 2 grid steps only on multi-TensorCore (v7x megacore) parts."""
    cap = max(1, budget_bytes // max(per_batch_bytes, 1))
    best = 1
    for d in range(1, min(b, 16, cap) + 1):
        if b % d != 0:
            continue
        if multi_tc and b > 1 and b // d < 2:
            continue
        best = d
    return best


def cross_attention_kernel(x1_ref, x2_ref, w_ref, b_ref, g_ref, beta_ref,
                           o_ref, sim_ref, *, c2, mm_dtype):
    # Blocks: x1 (Bb, nblk, C); x2 (Bb, N, C) resident across the N axis;
    #         w (C, C2P); b/g/beta (1, C2P); o (Bb, nblk, C2P); sim scratch (Bb, C, C).
    n_idx = pl.program_id(1)
    bblk, nblk, c = x1_ref.shape
    c2p = o_ref.shape[-1]

    # ---- once per batch block: both softmaxes + sim = q^T k (needs full N) ----
    @pl.when(n_idx == 0)
    def _():
        x2 = x2_ref[...].astype(jnp.float32)          # softmax stats in f32
        # query softmax over channels (dim=2): fully normalized -- the per-token
        # reciprocal must be folded into the MXU operand anyway.
        m_q = jnp.max(x2, axis=2, keepdims=True)
        e_q = jnp.exp(x2 - m_q)
        r_q = pl.reciprocal(jnp.sum(e_q, axis=2, keepdims=True), approx=True)
        qn = (e_q * r_q).astype(mm_dtype)
        # key softmax over tokens (dim=1): left UNnormalized here; its per-channel
        # reciprocal is applied below as a (C,) lane-scale on sim, replacing a full
        # (N, C) VALU multiply with a (C, C) one.
        m_k = jnp.max(x2, axis=1, keepdims=True)
        e_k = jnp.exp(x2 - m_k)
        r_k = pl.reciprocal(jnp.sum(e_k, axis=1, keepdims=True), approx=True)  # (Bb,1,C)
        # sim[b, i, j] = sum_n q[b, n, i] * k[b, n, j]  (same orientation as PyTorch)
        sim = jnp.einsum('bni,bnj->bij', qn, e_k.astype(mm_dtype),
                         preferred_element_type=jnp.float32)
        sim_ref[...] = (sim * r_k).astype(sim_ref.dtype)   # lane-broadcast scale

    # ---- per N-tile: att^T -> 1x1 conv -> LayerNorm ----
    sim = sim_ref[...]                                     # (Bb, C, C), mm dtype
    # att^T[b, n, i] = sum_j x1[b, n, j] * sim[b, i, j]
    att_t = jnp.einsum('bnj,bij->bni', x1_ref[...], sim,
                       preferred_element_type=jnp.float32)  # (Bb, nblk, C) f32

    # 1x1 conv == per-token linear.  Flatten (Bb, nblk) rows into one 2D matmul so
    # the MXU sees M = Bb*nblk (amortizes weight load / result drain); only when
    # the merge is (8,128)-tile aligned.
    if bblk == 1 or nblk % 8 == 0:
        att_m = att_t.reshape(bblk * nblk, c).astype(mm_dtype)
        y = jnp.dot(att_m, w_ref[...],
                    preferred_element_type=jnp.float32) + b_ref[...]
    else:
        y = jnp.einsum('bnc,cd->bnd', att_t.astype(mm_dtype), w_ref[...],
                       preferred_element_type=jnp.float32) + b_ref[...]

    # LayerNorm over the REAL c2 channels (biased variance, eps=1e-5).  Padded
    # lanes of y are exactly zero (zero-padded W columns / bias), so the padded
    # contribution to the statistics is removed exactly.
    inv_c2 = 1.0 / c2
    mean = jnp.sum(y, axis=-1, keepdims=True) * inv_c2
    diff = y - mean
    ss = jnp.sum(diff * diff, axis=-1, keepdims=True)
    ss = ss - float(c2p - c2) * (mean * mean)
    y_n = diff * lax.rsqrt(ss * inv_c2 + LN_EPS)
    # gamma/beta are zero on the padded lanes -> padded output is exactly 0.
    out = y_n * g_ref[...] + beta_ref[...]
    o_ref[...] = out.reshape(bblk, nblk, c2p).astype(o_ref.dtype)


def cross_attention(x1, x2, conv_w, conv_b, ln_gamma, ln_beta,
                    *, cast_f32_matmuls_to_bf16=False):
    """x1, x2: (B, N, C); conv_w: (2C, C); conv_b/ln_gamma/ln_beta: (2C,)."""
    B, N, C = x1.shape
    C2 = 2 * C
    # Lane-dense output: pad the conv output channel axis to a multiple of 128 so
    # stores are full-lane vst instead of masked partial stores.
    C2P = _rup(C2, 128)

    mm_dtype = x1.dtype
    if cast_f32_matmuls_to_bf16 and x1.dtype == jnp.float32:
        # Optional, accuracy-gated: native-MXU bf16 operands with f32 accumulation.
        mm_dtype = jnp.bfloat16

    w_t = jnp.zeros((C, C2P), dtype=mm_dtype).at[:, :C2].set(
        conv_w.T.astype(mm_dtype))
    b2 = jnp.zeros((1, C2P), jnp.float32).at[:, :C2].set(conv_b.astype(jnp.float32))
    g2 = jnp.zeros((1, C2P), jnp.float32).at[:, :C2].set(ln_gamma.astype(jnp.float32))
    be2 = jnp.zeros((1, C2P), jnp.float32).at[:, :C2].set(ln_beta.astype(jnp.float32))

    it = x1.dtype.itemsize
    mm_it = jnp.dtype(mm_dtype).itemsize
    C_lane = _rup(C, 128)   # (8,128) tile padding of the channel (lane) axis
    C_sub = _rup(C, 8)
    N_sub = _rup(N, 8)

    vmem_cap, num_tc = _tpu_vmem_and_cores()

    # N-tile size: bound the f32 post-sim slabs (att_t / y / diff / y_n) per step.
    post_budget = min(vmem_cap // 6, 16 * 2**20)
    per_row = (2 * C_lane + 2 * C2P) * it + 4 * (C_lane + 3 * C2P)
    nblk = _pick_nblk(N, per_row, post_budget)

    # Per-batch-element per-step VMEM, padded to (8,128) tiles.  Worst-case step is
    # n == 0 (softmax temporaries + the first tile's post-sim temporaries).
    per_batch = (
        2 * N_sub * C_lane * it            # x2 block (double-buffered, resident)
        + C_sub * C_lane * mm_it           # sim scratch
        + 3 * N_sub * C_lane * 4           # e_q / e_k / qn f32 peak at n == 0
        + 2 * nblk * C_lane * it           # x1 tile (double-buffered)
        + 2 * nblk * C2P * it              # output tile (double-buffered)
        + 4 * nblk * (C_lane + 3 * C2P)    # att_t / y / diff / y_n f32 temps
    )
    bblk_budget = (min(vmem_cap // 4, 14 * 2**20) if num_tc > 1
                   else min(vmem_cap // 3, 40 * 2**20))
    bblk = _pick_bblk(B, per_batch, bblk_budget, multi_tc=num_tc > 1)

    fixed = 2 * (C_sub * C2P * mm_it + 3 * 8 * C2P * 4)     # weight + bias/gamma/beta
    est = bblk * per_batch + fixed
    vmem_limit = int(min(max(est + 16 * 2**20, 32 * 2**20), int(0.85 * vmem_cap)))

    grid = (B // bblk, N // nblk)
    kernel = functools.partial(cross_attention_kernel, c2=C2, mm_dtype=mm_dtype)

    out_padded = pl.pallas_call(
        kernel,
        out_shape=jax.ShapeDtypeStruct((B, N, C2P), x1.dtype),
        grid_spec=pltpu.PrefetchScalarGridSpec(
            num_scalar_prefetch=0,
            grid=grid,
            in_specs=[
                pl.BlockSpec((bblk, nblk, C), lambda b, n: (b, n, 0)),  # x1: N-tiled
                pl.BlockSpec((bblk, N, C), lambda b, n: (b, 0, 0)),     # x2: full N, resident
                pl.BlockSpec((C, C2P), lambda b, n: (0, 0)),            # conv weight^T (padded)
                pl.BlockSpec((1, C2P), lambda b, n: (0, 0)),            # conv bias
                pl.BlockSpec((1, C2P), lambda b, n: (0, 0)),            # LN gamma
                pl.BlockSpec((1, C2P), lambda b, n: (0, 0)),            # LN beta
            ],
            out_specs=pl.BlockSpec((bblk, nblk, C2P), lambda b, n: (b, n, 0)),
            scratch_shapes=[pltpu.VMEM((bblk, C, C), mm_dtype)],
        ),
        compiler_params=pltpu.CompilerParams(
            dimension_semantics=("parallel", "arbitrary"),
            vmem_limit_bytes=vmem_limit,
        ),
    )(x1, x2, w_t, b2, g2, be2)

    if C2P != C2:
        # TODO(synk): if the consumer can take the lane-padded (B, N, C2P) layout,
        # drop this slice and save an extra HBM read+write of the output.
        return out_padded[..., :C2]
    return out_padded


def cross_attention_ref(x1, x2, conv_w, conv_b, ln_gamma, ln_beta):
    """Pure-JAX reference mirroring the PyTorch forward."""
    x1 = x1.astype(jnp.float32)
    x2 = x2.astype(jnp.float32)
    q = jax.nn.softmax(x2, axis=2)
    k = jax.nn.softmax(x2, axis=1)
    sim = jnp.einsum('bnc,bnd->bcd', q, k)               # (B, C, C)
    att = jnp.einsum('bcd,bnd->bcn', sim, x1)            # (B, C, N)
    y = jnp.einsum('oc,bcn->bon', conv_w, att) + conv_b[None, :, None]  # (B, 2C, N)
    y = jnp.transpose(y, (0, 2, 1))                      # (B, N, 2C)
    mean = jnp.mean(y, axis=-1, keepdims=True)
    var = jnp.mean((y - mean) ** 2, axis=-1, keepdims=True)
    return (y - mean) / jnp.sqrt(var + LN_EPS) * ln_gamma + ln_beta


if __name__ == "__main__":
    # Module config: value_dim = C, spatial h x w, N = h*w.
    B, C, h, w = 2, 8, 4, 4
    N = h * w
    C2 = 2 * C

    key = jax.random.PRNGKey(0)
    k1, k2, k3, k4 = jax.random.split(key, 4)
    x1 = jax.random.normal(k1, (B, N, C), dtype=jnp.float32)
    x2 = jax.random.normal(k2, (B, N, C), dtype=jnp.float32)

    # Deterministic parameter init (Conv2d(C, 2C, 1) -> weight (2C, C), bias (2C,);
    # LayerNorm(2C) -> gamma=ones, beta=zeros).
    conv_w = 0.05 * jax.random.normal(k3, (C2, C), dtype=jnp.float32)
    conv_b = 0.01 * jax.random.normal(k4, (C2,), dtype=jnp.float32)
    ln_gamma = jnp.ones((C2,), dtype=jnp.float32)
    ln_beta = jnp.zeros((C2,), dtype=jnp.float32)

    out = cross_attention(x1, x2, conv_w, conv_b, ln_gamma, ln_beta)
    out = jax.block_until_ready(out)

    ref = cross_attention_ref(x1, x2, conv_w, conv_b, ln_gamma, ln_beta)
    assert out.shape == (B, N, C2)
    # Tolerance covers the EUP approx-reciprocal softmax normalizations (relative
    # error ~1e-3) while still catching algebra/layout mistakes (O(1) errors).
    assert jnp.allclose(out, ref, atol=1e-2, rtol=1e-2), "mismatch vs reference"

    print("KERNEL_OK")
</pallas_src>

<mosaic_0001>
module attributes {stable_mosaic.version = 11 : i64} {
  func.func @cross_attention_kernel(%arg0: i32, %arg1: i32, %arg2: memref<2x16x8xf32, #tpu.memory_space<vmem>>, %arg3: memref<2x16x8xf32, #tpu.memory_space<vmem>>, %arg4: memref<8x128xf32, #tpu.memory_space<vmem>>, %arg5: memref<1x128xf32, #tpu.memory_space<vmem>>, %arg6: memref<1x128xf32, #tpu.memory_space<vmem>>, %arg7: memref<1x128xf32, #tpu.memory_space<vmem>>, %arg8: memref<2x16x128xf32, #tpu.memory_space<vmem>>, %arg9: memref<2x8x8xf32, #tpu.memory_space<vmem>>) attributes {dimension_semantics = [#tpu.dimension_semantics<parallel>, #tpu.dimension_semantics<arbitrary>], iteration_bounds = array<i64: 1, 1>, scalar_prefetch = 0 : i64, scratch_operands = 1 : i64, tpu.core_type = #tpu.core_type<tc>, window_params = [{transform_indices = @transform_0, window_bounds = array<i64: 2, 16, 8>}, {transform_indices = @transform_1, window_bounds = array<i64: 2, 16, 8>}, {pipeline_mode = #tpu.pipeline_mode<synchronous>, transform_indices = @transform_2, window_bounds = array<i64: 8, 128>}, {pipeline_mode = #tpu.pipeline_mode<synchronous>, transform_indices = @transform_3, window_bounds = array<i64: 1, 128>}, {pipeline_mode = #tpu.pipeline_mode<synchronous>, transform_indices = @transform_4, window_bounds = array<i64: 1, 128>}, {pipeline_mode = #tpu.pipeline_mode<synchronous>, transform_indices = @transform_5, window_bounds = array<i64: 1, 128>}, {transform_indices = @transform_6, window_bounds = array<i64: 2, 16, 128>}]} {
    %c0_i32 = arith.constant 0 : i32
    %0 = arith.cmpi eq, %arg1, %c0_i32 : i32
    %1 = arith.extui %0 : i1 to i32
    %c0_i32_0 = arith.constant 0 : i32
    %2 = arith.cmpi ne, %1, %c0_i32_0 : i32
    scf.if %2 {
      %c0_24 = arith.constant 0 : index
      %c0_25 = arith.constant 0 : index
      %c0_26 = arith.constant 0 : index
      %40 = vector.load %arg3[%c0_24, %c0_25, %c0_26] : memref<2x16x8xf32, #tpu.memory_space<vmem>>, vector<2x16x8xf32>
      %cst_27 = arith.constant dense<0xFF800000> : vector<2x16xf32>
      %41 = vector.multi_reduction <maximumf>, %40, %cst_27 [2] : vector<2x16x8xf32> to vector<2x16xf32>
      %42 = vector.shape_cast %41 : vector<2x16xf32> to vector<2x16x1xf32>
      %43 = vector.broadcast %42 : vector<2x16x1xf32> to vector<2x16x8xf32>
      %44 = arith.subf %40, %43 : vector<2x16x8xf32>
      %45 = math.exp %44 : vector<2x16x8xf32>
      %cst_28 = arith.constant dense<0.000000e+00> : vector<2x16xf32>
      %46 = vector.multi_reduction <add>, %45, %cst_28 [2] : vector<2x16x8xf32> to vector<2x16xf32>
      %47 = vector.shape_cast %46 : vector<2x16xf32> to vector<2x16x1xf32>
      %48 = tpu.reciprocal %47 {approx = true} : vector<2x16x1xf32> -> vector<2x16x1xf32>
      %49 = vector.broadcast %48 : vector<2x16x1xf32> to vector<2x16x8xf32>
      %50 = arith.mulf %45, %49 : vector<2x16x8xf32>
      %cst_29 = arith.constant dense<0xFF800000> : vector<2x8xf32>
      %51 = vector.multi_reduction <maximumf>, %40, %cst_29 [1] : vector<2x16x8xf32> to vector<2x8xf32>
      %52 = vector.shape_cast %51 : vector<2x8xf32> to vector<2x1x8xf32>
      %53 = vector.broadcast %52 : vector<2x1x8xf32> to vector<2x16x8xf32>
      %54 = arith.subf %40, %53 : vector<2x16x8xf32>
      %55 = math.exp %54 : vector<2x16x8xf32>
      %cst_30 = arith.constant dense<0.000000e+00> : vector<2x8xf32>
      %56 = vector.multi_reduction <add>, %55, %cst_30 [1] : vector<2x16x8xf32> to vector<2x8xf32>
      %57 = vector.shape_cast %56 : vector<2x8xf32> to vector<2x1x8xf32>
      %58 = tpu.reciprocal %57 {approx = true} : vector<2x1x8xf32> -> vector<2x1x8xf32>
      "tpu.trace_start"() <{level = 10 : i32, message = "bni,bnj->bij"}> : () -> ()
      %cst_31 = arith.constant dense<0.000000e+00> : vector<2x8x8xf32>
      %59 = tpu.matmul %50, %55, %cst_31 {dimension_numbers = #tpu.dot_dimension_numbers<[1], [1], [2], [2], [0, 0, 0, 2, 1, 2], [0], [0]>} : vector<2x16x8xf32>, vector<2x16x8xf32>, vector<2x8x8xf32> -> vector<2x8x8xf32>
      "tpu.trace_stop"() : () -> ()
      %60 = vector.broadcast %58 : vector<2x1x8xf32> to vector<2x8x8xf32>
      %61 = arith.mulf %59, %60 : vector<2x8x8xf32>
      %c0_32 = arith.constant 0 : index
      %c0_33 = arith.constant 0 : index
      %c0_34 = arith.constant 0 : index
      %62 = vector.load %arg9[%c0_32, %c0_33, %c0_34] : memref<2x8x8xf32, #tpu.memory_space<vmem>>, vector<2x8x8xf32>
      tpu.vector_store %arg9[%c0_32, %c0_33, %c0_34], %61 {strides = array<i32>} : memref<2x8x8xf32, #tpu.memory_space<vmem>>, vector<2x8x8xf32>,
    } else {
    }
    %c0 = arith.constant 0 : index
    %c0_1 = arith.constant 0 : index
    %c0_2 = arith.constant 0 : index
    %3 = vector.load %arg9[%c0, %c0_1, %c0_2] : memref<2x8x8xf32, #tpu.memory_space<vmem>>, vector<2x8x8xf32>
    %c0_3 = arith.constant 0 : index
    %c0_4 = arith.constant 0 : index
    %c0_5 = arith.constant 0 : index
    %4 = vector.load %arg2[%c0_3, %c0_4, %c0_5] : memref<2x16x8xf32, #tpu.memory_space<vmem>>, vector<2x16x8xf32>
    "tpu.trace_start"() <{level = 10 : i32, message = "bnj,bij->bni"}> : () -> ()
    %cst = arith.constant dense<0.000000e+00> : vector<2x16x8xf32>
    %5 = tpu.matmul %4, %3, %cst {dimension_numbers = #tpu.dot_dimension_numbers<[2], [2], [1], [1], [0, 0, 0, 1, 1, 1], [0], [0]>} : vector<2x16x8xf32>, vector<2x8x8xf32>, vector<2x16x8xf32> -> vector<2x16x8xf32>
    "tpu.trace_stop"() : () -> ()
    %6 = vector.shape_cast %5 : vector<2x16x8xf32> to vector<32x8xf32>
    %c0_6 = arith.constant 0 : index
    %c0_7 = arith.constant 0 : index
    %7 = vector.load %arg4[%c0_6, %c0_7] : memref<8x128xf32, #tpu.memory_space<vmem>>, vector<8x128xf32>
    %cst_8 = arith.constant dense<0.000000e+00> : vector<32x128xf32>
    %8 = tpu.matmul %6, %7, %cst_8 {dimension_numbers = #tpu.dot_dimension_numbers<[1], [0], [0], [1], [0, 0, 1, 1], [], []>} : vector<32x8xf32>, vector<8x128xf32>, vector<32x128xf32> -> vector<32x128xf32>
    %c0_9 = arith.constant 0 : index
    %c0_10 = arith.constant 0 : index
    %9 = vector.load %arg5[%c0_9, %c0_10] : memref<1x128xf32, #tpu.memory_space<vmem>>, vector<1x128xf32>
    %10 = vector.broadcast %9 : vector<1x128xf32> to vector<32x128xf32>
    %11 = arith.addf %8, %10 : vector<32x128xf32>
    %cst_11 = arith.constant dense<0.000000e+00> : vector<32xf32>
    %12 = vector.multi_reduction <add>, %11, %cst_11 [1] : vector<32x128xf32> to vector<32xf32>
    %13 = vector.shape_cast %12 : vector<32xf32> to vector<32x1xf32>
    %cst_12 = arith.constant 6.250000e-02 : f32
    %14 = vector.broadcast %cst_12 : f32 to vector<32x1xf32>
    %15 = arith.mulf %13, %14 : vector<32x1xf32>
    %16 = vector.broadcast %15 : vector<32x1xf32> to vector<32x128xf32>
    %17 = arith.subf %11, %16 : vector<32x128xf32>
    %18 = arith.mulf %17, %17 : vector<32x128xf32>
    %cst_13 = arith.constant dense<0.000000e+00> : vector<32xf32>
    %19 = vector.multi_reduction <add>, %18, %cst_13 [1] : vector<32x128xf32> to vector<32xf32>
    %20 = vector.shape_cast %19 : vector<32xf32> to vector<32x1xf32>
    %21 = arith.mulf %15, %15 : vector<32x1xf32>
    %cst_14 = arith.constant 1.120000e+02 : f32
    %22 = vector.broadcast %cst_14 : f32 to vector<32x1xf32>
    %23 = arith.mulf %22, %21 : vector<32x1xf32>
    %24 = arith.subf %20, %23 : vector<32x1xf32>
    %cst_15 = arith.constant 6.250000e-02 : f32
    %25 = vector.broadcast %cst_15 : f32 to vector<32x1xf32>
    %26 = arith.mulf %24, %25 : vector<32x1xf32>
    %cst_16 = arith.constant 9.99999974E-6 : f32
    %27 = vector.broadcast %cst_16 : f32 to vector<32x1xf32>
    %28 = arith.addf %26, %27 : vector<32x1xf32>
    %29 = math.rsqrt %28 : vector<32x1xf32>
    %30 = vector.broadcast %29 : vector<32x1xf32> to vector<32x128xf32>
    %31 = arith.mulf %17, %30 : vector<32x128xf32>
    %c0_17 = arith.constant 0 : index
    %c0_18 = arith.constant 0 : index
    %32 = vector.load %arg6[%c0_17, %c0_18] : memref<1x128xf32, #tpu.memory_space<vmem>>, vector<1x128xf32>
    %33 = vector.broadcast %32 : vector<1x128xf32> to vector<32x128xf32>
    %34 = arith.mulf %31, %33 : vector<32x128xf32>
    %c0_19 = arith.constant 0 : index
    %c0_20 = arith.constant 0 : index
    %35 = vector.load %arg7[%c0_19, %c0_20] : memref<1x128xf32, #tpu.memory_space<vmem>>, vector<1x128xf32>
    %36 = vector.broadcast %35 : vector<1x128xf32> to vector<32x128xf32>
    %37 = arith.addf %34, %36 : vector<32x128xf32>
    %38 = vector.shape_cast %37 : vector<32x128xf32> to vector<2x16x128xf32>
    %c0_21 = arith.constant 0 : index
    %c0_22 = arith.constant 0 : index
    %c0_23 = arith.constant 0 : index
    %39 = vector.load %arg8[%c0_21, %c0_22, %c0_23] : memref<2x16x128xf32, #tpu.memory_space<vmem>>, vector<2x16x128xf32>
    tpu.vector_store %arg8[%c0_21, %c0_22, %c0_23], %38 {strides = array<i32>} : memref<2x16x128xf32, #tpu.memory_space<vmem>>, vector<2x16x128xf32>,
    return
  }
  func.func @transform_0(%arg0: i32, %arg1: i32) -> (i32, i32, i32) {
    %c0_i32 = arith.constant 0 : i32
    %c0_i32_0 = arith.constant 0 : i32
    return %arg0, %arg1, %c0_i32 : i32, i32, i32
  }
  func.func @transform_1(%arg0: i32, %arg1: i32) -> (i32, i32, i32) {
    %c0_i32 = arith.constant 0 : i32
    %c0_i32_0 = arith.constant 0 : i32
    %c0_i32_1 = arith.constant 0 : i32
    return %arg0, %c0_i32, %c0_i32_0 : i32, i32, i32
  }
  func.func @transform_2(%arg0: i32, %arg1: i32) -> (i32, i32) {
    %c0_i32 = arith.constant 0 : i32
    %c0_i32_0 = arith.constant 0 : i32
    %c0_i32_1 = arith.constant 0 : i32
    return %c0_i32, %c0_i32_0 : i32, i32
  }
  func.func @transform_3(%arg0: i32, %arg1: i32) -> (i32, i32) {
    %c0_i32 = arith.constant 0 : i32
    %c0_i32_0 = arith.constant 0 : i32
    %c0_i32_1 = arith.constant 0 : i32
    return %c0_i32, %c0_i32_0 : i32, i32
  }
  func.func @transform_4(%arg0: i32, %arg1: i32) -> (i32, i32) {
    %c0_i32 = arith.constant 0 : i32
    %c0_i32_0 = arith.constant 0 : i32
    %c0_i32_1 = arith.constant 0 : i32
    return %c0_i32, %c0_i32_0 : i32, i32
  }
  func.func @transform_5(%arg0: i32, %arg1: i32) -> (i32, i32) {
    %c0_i32 = arith.constant 0 : i32
    %c0_i32_0 = arith.constant 0 : i32
    %c0_i32_1 = arith.constant 0 : i32
    return %c0_i32, %c0_i32_0 : i32, i32
  }
  func.func @transform_6(%arg0: i32, %arg1: i32) -> (i32, i32, i32) {
    %c0_i32 = arith.constant 0 : i32
    %c0_i32_0 = arith.constant 0 : i32
    return %arg0, %arg1, %c0_i32 : i32, i32, i32
  }
}

</mosaic_0001>

<bundles_post_ra>
// kernel: tpu_custom_call.1
= control target key start
LH: loop header
LB: loop body
LE: loop exit
PB: predicated region body
PF: predicated region fallthrough
CT: control target
= control target key end

     0   :  { %vm32_vm0 = vcmask 64512   ;;  %s983_s0 = inlined_call_operand.vmem [shape: f32[2,16,8], index: 0, kind: input, shape index: {}]   ;;  %s984_s1 = inlined_call_operand.vmem [shape: f32[2,16,8], index: 1, kind: input, shape index: {}]   ;;  %s985_s2 = inlined_call_operand.vmem [shape: f32[8,128], index: 2, kind: input, shape index: {}]   ;;  %s986_s3 = inlined_call_operand.vmem [shape: f32[1,128], index: 3, kind: input, shape index: {}]   ;;  %s987_s4 = inlined_call_operand.vmem [shape: f32[1,128], index: 4, kind: input, shape index: {}]   ;;  %s988_s5 = inlined_call_operand.vmem [shape: f32[1,128], index: 5, kind: input, shape index: {}]   ;;  %s989_s6 = inlined_call_operand.hbm [shape: f32[2,16,128], index: 6, kind: output, shape index: {}]  }
   0x1   :  { %v28_v0 = vld [vmem:[%s984_s1] sm:$0xff]  ;;  %v899_v1 = vld [vmem:[%s984_s1 + $0x10] sm:$0xff]  ;;  %v29_v2 = vld [vmem:[%s984_s1 + $0x8] sm:$0xff] }
   0x2   :  { %v33_v3 = vsel %vm32_vm0, %v28_v0, -inf  ;;  %v39_v4 = vsel %vm32_vm0, %v899_v1, -inf  ;;  %v36_v5 = vsel %vm32_vm0, %v29_v2, -inf  ;;  %v911_v6 = vld [vmem:[%s984_s1 + $0x18] sm:$0xff] }
   0x3   :  { %11 = vsyncpa [#allocation4], 0  ;;  %34 = vmax.xlane.f32.xlu0 %v33_v3  ;;  %40 = vmax.xlane.f32.xlu1 %v39_v4  ;;  %v77_v7 = vmax.f32 %v33_v3, %v36_v5  ;;  %v42_v8 = vsel %vm32_vm0, %v911_v6, -inf  ;;  %v852_v43 = vmov 0.0|0.0   ;;  %vm853_vm1 = vmmov 0   ;;  %s855_s17 = smov [#allocation3]  }
   0x4   :  { %v915_v9 = vmax.f32 %v39_v4, %v42_v8  ;;  %780 = vmatprep.subr.bf16.mxu1 %v852_v43  ;;  %v854_v44 = vmov 0.0   ;;  %vm155_vm2 = vcmask 130048   ;;  %s705_s18 = sshll.u32 %s855_s17, 4  ;;  %s706_s18 = int_to_ptr.vmem [resolvable:$true] %s705_s18 }
   0x5   :  { %v78_v20 = vrot.slane %v77_v7, 4  ;;  %752 = vmatprep.mubr.msk.f32.mxu1 %vm853_vm1, %v854_v44  ;;  %p833_p1 = scmp.lt.s32.totalorder %s706_s18, %s706_s18 }
   0x6   :  { %v85_v57 = vrot.slane %v915_v9, 4 }
   0x7   :  { %37 = vmax.xlane.f32.xlu0 %v36_v5  ;;  %43 = vmax.xlane.f32.xlu1 %v42_v8  ;;  %v79_v23 = vmax.f32 %v77_v7, %v78_v20 }
   0x8   :  { %v86_v58 = vmax.f32 %v915_v9, %v85_v57 }
   0x9   :  { %v80_v25 = vrot.slane %v79_v23, 2 }
   0xa   :  { %v87_v59 = vrot.slane %v86_v58, 2 }
   0xb   :  { %v81_v30 = vmax.f32 %v79_v23, %v80_v25 }
   0xc   :  { %v88_v60 = vmax.f32 %v86_v58, %v87_v59 }
   0xd   :  { %v82_v34 = vrot.slane %v81_v30, 1 }
   0xe   :  { %v89_v61 = vrot.slane %v88_v60, 1 }
   0xf   :  { %v83_v35 = vmax.f32 %v81_v30, %v82_v34 }
  0x10   :  { %v90_v62 = vmax.f32 %v88_v60, %v89_v61 }
  0x11   :  { %v91_v36 = vsub.f32 %v28_v0, %v83_v35  ;;  %v92_v37 = vsub.f32 %v29_v2, %v83_v35 }
  0x12   :  { %v93_v63 = vsub.f32 %v899_v1, %v90_v62 }
  0x13   :  { %v95_v38 = vmul.f32 1.442695, %v91_v36  ;;  %v97_v39 = vmul.f32 1.442695, %v92_v37  ;;  %v513_v37 = vld [vmem:[%s985_s2] sm:$0xff] }
  0x90   :  { %v35_v10 = vpop.xlane.xlu0 %34  ;;  %v41_v11 = vpop.xlane.xlu1 %40 }
  0x91   :  { %v45_v12 = vsub.f32 %v28_v0, %v35_v10  ;;  %v47_v13 = vsub.f32 %v899_v1, %v41_v11  ;;  %v94_v0 = vsub.f32 %v911_v6, %v90_v62  ;;  %v340_v1 = vld [vmem:[%s983_s0] sm:$0xff] }
  0x92   :  { %764 = vmatprep.mubr.msk.f32.mxu0 %vm32_vm0, %v340_v1 }
  0x93   :  { %v49_v14 = vmul.f32 1.442695, %v45_v12  ;;  %v53_v15 = vmul.f32 1.442695, %v47_v13  ;;  %v101_v3 = vmul.f32 1.442695, %v94_v0 }
  0x94   :  { %v38_v16 = vpop.xlane.xlu0 %37  ;;  %v44_v17 = vpop.xlane.xlu1 %43 }
  0x95   :  { %792 = vpow2.f32 %v49_v14  ;;  %v46_v18 = vsub.f32 %v29_v2, %v38_v16  ;;  %v48_v19 = vsub.f32 %v911_v6, %v44_v17  ;;  %v99_v2 = vmul.f32 1.442695, %v93_v63  ;;  %v342_v6 = vld [vmem:[%s983_s0 + $0x10] sm:$0xff] }
  0x96   :  { %794 = vpow2.f32 %v53_v15 }
  0x97   :  { %v51_v21 = vmul.f32 1.442695, %v46_v18  ;;  %v55_v22 = vmul.f32 1.442695, %v48_v19 }
  0x99   :  { %796 = vpow2.f32 %v51_v21 }
  0x9a   :  { %798 = vpow2.f32 %v55_v22 }
  0x9b   :  { %800 = vpow2.f32 %v95_v38  ;;  %v341_v38 = vld [vmem:[%s983_s0 + $0x8] sm:$0xff] }
  0x9c   :  { %802 = vpow2.f32 %v97_v39 }
  0x9f   :  { %v793_v24 = vpop.eup %792 }
  0xa0   :  { %v795_v26 = vpop.eup %794  ;;  %v57_v27 = vsel %vm32_vm0, %v793_v24, 0.0 }
  0xa1   :  { %58 = vadd.xlane.f32.xlu0 %v57_v27  ;;  %v63_v28 = vsel %vm32_vm0, %v795_v26, 0.0 }
  0xa3   :  { %v797_v29 = vpop.eup %796 }
  0xa4   :  { %v799_v31 = vpop.eup %798  ;;  %v60_v32 = vsel %vm32_vm0, %v797_v29, 0.0 }
  0xa5   :  { %64 = vadd.xlane.f32.xlu0 %v63_v28  ;;  %61 = vadd.xlane.f32.xlu1 %v60_v32  ;;  %v66_v33 = vsel %vm32_vm0, %v799_v31, 0.0  ;;  %v801_v40 = vpop.eup %800 }
  0xa6   :  { %v803_v41 = vpop.eup %802  ;;  %v103_v11 = vsel %vm32_vm0, %v801_v40, 0.0 }
  0xa7   :  { %v781_v42 = vpack.c.bf16 %v803_v41, %v801_v40  ;;  %v104_v10 = vsel %vm32_vm0, %v803_v41, 0.0  ;;  %v343_v40 = vld [vmem:[%s983_s0 + $0x18] sm:$0xff] }
  0xa8   :  { %v105_v12 = vadd.f32 %v104_v10, %v103_v11 }
  0xa9   :  { %67 = vadd.xlane.f32.xlu1 %v66_v33  ;;  %782 = vmatpush3.bf16.msra.mxu1 %v781_v42 }
  0xaa   :  { %783 = vmatprep.subr.bf16.mxu1 %v852_v43  ;;  %v106_v15 = vrot.slane %v105_v12, 4 }
  0xac   :  { %v107_v17 = vadd.f32 %v106_v15, %v105_v12 }
  0xae   :  { %v108_v19 = vrot.slane %v107_v17, 2 }
  0xb0   :  { %v109_v21 = vadd.f32 %v108_v19, %v107_v17 }
  0xb2   :  { %v110_v23 = vrot.slane %v109_v21, 1 }
  0xb4   :  { %v111_v25 = vadd.f32 %v110_v23, %v109_v21 }
 0x12e   :  { %v59_v45 = vpop.xlane.xlu0 %58 }
 0x12f   :  { %804 = vrcp.f32 %v59_v45  ;;  %v724_v45 = vld [vmem:[%s986_s3] ss:$0 sm:$0xff] }
 0x132   :  { %v62_v46 = vpop.xlane.xlu1 %61  ;;  %v65_v47 = vpop.xlane.xlu0 %64 }
 0x133   :  { %806 = vrcp.f32 %v62_v46 }
 0x134   :  { %808 = vrcp.f32 %v65_v47 }
 0x136   :  { %v68_v48 = vpop.xlane.xlu1 %67 }
 0x137   :  { %810 = vrcp.f32 %v68_v48 }
 0x138   :  { %812 = vpow2.f32 %v99_v2 }
 0x139   :  { %v805_v49 = vpop.eup %804  ;;  %814 = vpow2.f32 %v101_v3 }
 0x13a   :  { %v73_v50 = vmul.f32 %v805_v49, %v793_v24  ;;  %816 = vrcp.f32 %v111_v25 }
 0x13c   :  { %123 = vxpose.xlu0.b32.start [1/2] (short) (narrow) %v73_v50, 8 }
 0x13d   :  { %v807_v51 = vpop.eup %806 }
 0x13e   :  { %v809_v52 = vpop.eup %808  ;;  %v74_v53 = vmul.f32 %v807_v51, %v797_v29 }
 0x13f   :  { %v75_v54 = vmul.f32 %v809_v52, %v795_v26 }
 0x140   :  { %124 = vxpose.xlu0.b32.end [2/2] (short) (narrow) %v74_v53, 8 }
 0x141   :  { %v811_v55 = vpop.eup %810  ;;  %229 = vxpose.xlu1.b32.start [1/2] (short) (narrow) %v75_v54, 8 }
 0x142   :  { %v76_v56 = vmul.f32 %v811_v55, %v799_v31  ;;  %v813_v4 = vpop.eup %812 }
 0x143   :  { %v815_v5 = vpop.eup %814  ;;  %v112_v14 = vsel %vm32_vm0, %v813_v4, 0.0 }
 0x144   :  { %v784_v7 = vpack.c.bf16 %v815_v5, %v813_v4  ;;  %v113_v13 = vsel %vm32_vm0, %v815_v5, 0.0  ;;  %v817_v28 = vpop.eup %816 }
 0x145   :  { %230 = vxpose.xlu1.b32.end [2/2] (short) (narrow) %v76_v56, 8  ;;  %v114_v16 = vadd.f32 %v113_v13, %v112_v14 }
 0x147   :  { %v115_v18 = vrot.slane %v114_v16, 4 }
 0x149   :  { %v116_v20 = vadd.f32 %v115_v18, %v114_v16 }
 0x14b   :  { %v117_v22 = vrot.slane %v116_v20, 2 }
 0x14d   :  { %v118_v24 = vadd.f32 %v117_v22, %v116_v20 }
 0x14f   :  { %v119_v26 = vrot.slane %v118_v24, 1 }
 0x151   :  { %v120_v27 = vadd.f32 %v119_v26, %v118_v24 }
 0x153   :  { %818 = vrcp.f32 %v120_v27 }
 0x15d   :  { %v819_v32 = vpop.eup %818 }
 0x1bc   :  { %v139_v8 = vpop.trf.xlu0 }
 0x1bd   :  { %753 = vmatmul.mubr.msk.f32.vlgmr.msra.gmra.mrb[0].mxu1 %vm155_vm2, %v139_v8 }
 0x1be   :  { %785 = vmatpush3.bf16.msra.mxu1 %v784_v7  ;;  %759 = vmatprep.mubr.msk.f32.mxu1 %vm853_vm1, %v854_v44 }
 0x1c1   :  { %v245_v9 = vpop.trf.xlu1 }
 0x1c2   :  { %760 = vmatmul.mubr.msk.f32.vlgmr.msra.gmra.mrb[2].mxu1 %vm155_vm2, %v245_v9 }
 0x1c3   :  { %769 = vmatprep.mubr.msk.f32.mxu1 %vm32_vm0, %v342_v6 }
 0x290   :  { %v225_v29 = vpop.f32.mrb[0].mxu1 }
 0x291   :  { %v334_v30 = vmul.f32 %v817_v28, %v225_v29  ;;  %v754_v31 = vpop.f32.mrb[1].mxu1 }
 0x292   :  { %v729_v31 = vld [vmem:[%s987_s4] ss:$0 sm:$0xff]  ;;  %s828_s4 = scalar_lea.vmem %s706_s18, 512 }
 0x293   :  { %336 = vst.msk [vmem:[#allocation2] sm:$0xff] %vm32_vm0, %v334_v30  ;;  %p829_p0 = scmp.ne.s32.totalorder %s706_s18, %s828_s4  ;;  %p834_p2 = scmp.lt.s32.totalorder %s828_s4, %s828_s4 }
 0x295   :  { %v330_v33 = vpop.f32.mrb[2].mxu1  ;;  %p835_p3 = por %p834_p2, %p833_p1 }
 0x296   :  { %v335_v34 = vmul.f32 %v819_v32, %v330_v33  ;;  %v761_v35 = vpop.f32.mrb[3].mxu1 }
 0x297   :  { %v730_v35 = vld [vmem:[%s988_s5] ss:$0 sm:$0xff]  ;;  %p836_p4 = pnand %p835_p3, %p829_p0 }
 0x298   :  { %337 = vst.msk [vmem:[#allocation2 + $0x8] sm:$0xff] %vm32_vm0, %v335_v34 }
 0x29a   :  { %v338_v36 = vld [vmem:[#allocation2] sm:$0xff] }
 0x29b   :  { %762 = vmatprep.subr.msk.mxu0 %vm32_vm0, %v338_v36 }
 0x29c   :  { %763 = vmatpush3.xpose.msk.msra.mxu0 %vm32_vm0, %v338_v36 }
 0x29d   :  { %772 = vmatprep.subr.mxu0 %v513_v37 }
 0x29f   :  { %765 = vmatmul.mubr.msk.f32.vlgmr.msra.gmra.mrb[0].mxu0 %vm32_vm0, %v341_v38  ;;  %v339_v39 = vld [vmem:[#allocation2 + $0x8] sm:$0xff] }
 0x2a0   :  { %767 = vmatprep.subr.msk.mxu1 %vm32_vm0, %v339_v39  ;;  %773 = vmatpush3.msra.mxu0 %v513_v37 }
 0x2a1   :  { %768 = vmatpush3.xpose.msk.msra.mxu1 %vm32_vm0, %v339_v39 }
 0x2a4   :  { %770 = vmatmul.mubr.msk.f32.vlgmr.msra.gmra.mrb[4].mxu1 %vm32_vm0, %v343_v40 }
 0x372   :  { %v766_v41 = vpop.f32.mrb[0].mxu0 }
 0x373   :  { %v420_v42 = vpop.f32.mrb[1].mxu0 }
 0x374   :  { %774 = vmatprep.mubr.msk.f32.mxu0 %vm32_vm0, %v420_v42 }
 0x375   :  { %775 = vmatmul.mubr.msk.f32.vlgmr.msra.gmra.mrb[2].mxu0 %vm32_vm0, %v766_v41 }
 0x377   :  { %v771_v43 = vpop.f32.mrb[4].mxu1 }
 0x378   :  { %v504_v44 = vpop.f32.mrb[5].mxu1 }
 0x379   :  { %777 = vmatprep.mubr.msk.f32.mxu0 %vm32_vm0, %v504_v44 }
 0x37a   :  { %778 = vmatmul.mubr.msk.f32.gmra.mrb[4].mxu0 %vm32_vm0, %v771_v43 }
 0x448   :  { %v776_v46 = vpop.f32.mrb[2].mxu0 }
 0x449   :  { %v605_v47 = vadd.f32 %v776_v46, %v724_v45  ;;  %v599_v48 = vpop.f32.mrb[3].mxu0 }
 0x44a   :  { %v600_v49 = vadd.f32 %v724_v45, %v599_v48 }
 0x44b   :  { %620 = vadd.xlane.f32.xlu1 %v605_v47 }
 0x44c   :  { %618 = vadd.xlane.f32.xlu0 %v600_v49 }
 0x44d   :  { %v779_v50 = vpop.f32.mrb[4].mxu0 }
 0x44e   :  { %v615_v51 = vadd.f32 %v779_v50, %v724_v45  ;;  %v609_v52 = vpop.f32.mrb[5].mxu0 }
 0x44f   :  { %v610_v53 = vadd.f32 %v724_v45, %v609_v52 }
 0x450   :  { %624 = vadd.xlane.f32.xlu1 %v615_v51 }
 0x451   :  { %622 = vadd.xlane.f32.xlu0 %v610_v53 }
 0x4d8   :  { %v621_v54 = vpop.xlane.xlu1 %620 }
 0x4d9   :  { %v627_v55 = vmul.f32 0.0625, %v621_v54  ;;  %v619_v56 = vpop.xlane.xlu0 %618 }
 0x4da   :  { %v626_v57 = vmul.f32 0.0625, %v619_v56 }
 0x4db   :  { %v631_v58 = vsub.f32 %v605_v47, %v627_v55  ;;  %v647_v8 = vmul.f32 %v627_v55, %v627_v55 }
 0x4dc   :  { %v630_v59 = vsub.f32 %v600_v49, %v626_v57  ;;  %v646_v9 = vmul.f32 %v626_v57, %v626_v57 }
 0x4dd   :  { %v625_v60 = vpop.xlane.xlu1 %624  ;;  %v635_v61 = vmul.f32 %v631_v58, %v631_v58  ;;  %v651_v1 = vmul.f32 112.0, %v647_v8 }
 0x4de   :  { %v629_v62 = vmul.f32 0.0625, %v625_v60  ;;  %v623_v63 = vpop.xlane.xlu0 %622  ;;  %v634_v0 = vmul.f32 %v630_v59, %v630_v59  ;;  %v650_v11 = vmul.f32 112.0, %v646_v9 }
 0x4df   :  { %v628_v2 = vmul.f32 0.0625, %v623_v63  ;;  %640 = vadd.xlane.f32.xlu1 %v635_v61 }
 0x4e0   :  { %v633_v3 = vsub.f32 %v615_v51, %v629_v62  ;;  %638 = vadd.xlane.f32.xlu0 %v634_v0  ;;  %v649_v6 = vmul.f32 %v629_v62, %v629_v62 }
 0x4e1   :  { %v632_v4 = vsub.f32 %v610_v53, %v628_v2  ;;  %v648_v12 = vmul.f32 %v628_v2, %v628_v2 }
 0x4e2   :  { %v637_v5 = vmul.f32 %v633_v3, %v633_v3  ;;  %v653_v18 = vmul.f32 112.0, %v649_v6 }
 0x4e3   :  { %v636_v7 = vmul.f32 %v632_v4, %v632_v4  ;;  %v652_v21 = vmul.f32 112.0, %v648_v12 }
 0x4e4   :  { %644 = vadd.xlane.f32.xlu1 %v637_v5 }
 0x4e5   :  { %642 = vadd.xlane.f32.xlu0 %v636_v7 }
 0x56c   :  { %v641_v10 = vpop.xlane.xlu1 %640 }
 0x56d   :  { %v655_v13 = vsub.f32 %v641_v10, %v651_v1  ;;  %v639_v14 = vpop.xlane.xlu0 %638 }
 0x56e   :  { %v654_v15 = vsub.f32 %v639_v14, %v650_v11 }
 0x56f   :  { %v659_v16 = vmul.f32 0.0625, %v655_v13 }
 0x570   :  { %v658_v17 = vmul.f32 0.0625, %v654_v15 }
 0x571   :  { %v663_v19 = vadd.f32 1e-05, %v659_v16  ;;  %v645_v20 = vpop.xlane.xlu1 %644 }
 0x572   :  { %v662_v22 = vadd.f32 1e-05, %v658_v17  ;;  %v657_v23 = vsub.f32 %v645_v20, %v653_v18  ;;  %v643_v24 = vpop.xlane.xlu0 %642 }
 0x573   :  { %820 = vrsqrt.f32 %v663_v19  ;;  %v656_v25 = vsub.f32 %v643_v24, %v652_v21 }
 0x574   :  { %822 = vrsqrt.f32 %v662_v22  ;;  %v661_v26 = vmul.f32 0.0625, %v657_v23 }
 0x575   :  { %v660_v27 = vmul.f32 0.0625, %v656_v25 }
 0x576   :  { %v665_v28 = vadd.f32 1e-05, %v661_v26 }
 0x577   :  { %v664_v29 = vadd.f32 1e-05, %v660_v27 }
 0x578   :  { %824 = vrsqrt.f32 %v665_v28 }
 0x579   :  { %826 = vrsqrt.f32 %v664_v29 }
 0x57d   :  { %v821_v30 = vpop.eup %820 }
 0x57e   :  { %v823_v32 = vpop.eup %822  ;;  %v671_v33 = vmul.f32 %v821_v30, %v631_v58 }
 0x57f   :  { %v670_v34 = vmul.f32 %v823_v32, %v630_v59 }
 0x580   :  { %v682_v36 = vmul.f32 %v729_v31, %v671_v33 }
 0x581   :  { %v681_v37 = vmul.f32 %v729_v31, %v670_v34 }
 0x582   :  { %v825_v38 = vpop.eup %824  ;;  %v693_v39 = vadd.f32 %v730_v35, %v682_v36 }
 0x583   :  { %v827_v40 = vpop.eup %826  ;;  %v673_v41 = vmul.f32 %v825_v38, %v633_v3  ;;  %v692_v42 = vadd.f32 %v730_v35, %v681_v37 }
 0x584   :  { %v672_v43 = vmul.f32 %v827_v40, %v632_v4  ;;  %697 = vst [vmem:[#allocation3 + $0x8] sm:$0xff] %v693_v39 }
 0x585   :  { %v684_v44 = vmul.f32 %v729_v31, %v673_v41  ;;  %696 = vst [vmem:[#allocation3] sm:$0xff] %v692_v42 }
 0x586   :  { %v683_v45 = vmul.f32 %v729_v31, %v672_v43 }
 0x587   :  { %v695_v46 = vadd.f32 %v730_v35, %v684_v44 }
 0x588   :  { %v694_v47 = vadd.f32 %v730_v35, %v683_v45 }
 0x589   :  { %699 = vst [vmem:[#allocation3 + $0x18] sm:$0xff] %v695_v46 }
 0x58a   :  { %698 = vst [vmem:[#allocation3 + $0x10] sm:$0xff] %v694_v47 }
 0x58b   :  { %839 = shalt.err (!%p836_p4)
}
 0x58c   :  { %s840_s20 = scalar_lea.hbm %s989_s6, 512 }
 0x58d   :  { %p841_p5 = scmp.ne.s32.totalorder %s989_s6, %s840_s20  ;;  %p844_p6 = scmp.lt.u32.totalorder %s840_s20, %s989_s6 }
 0x58f   :  { %p846_p7 = pnand %p844_p6, %p841_p5 }
 0x591   :  { %849 = shalt.err (!%p846_p7)
}
 0x592   :  { %s856_s25 = smov 128   ;;  %s857_s26 = smov 8  }
 0x593   :  { %711 = dma.vmem_to_hbm [thread:$0]  %s706_s18, 512, %s989_s6, [#allocation4], %s856_s25, %s856_s25, %s857_s26  }
 0x594   :  { %850 = dma.done.wait [#allocation4], 512  }
 0x595   :  { %851 = vsyncadd [#allocation4], 4294966784 }
 0x596   :  { %715 = vsyncpa [#allocation4], 1 }

</bundles_post_ra>
